<compile_context>
chip_gen: v7x
topology: tpu7x:2x2x1
jax: 0.10.0
libtpu: 0.0.40
codegen_flags: <defaults>
</compile_context>

<pallas_src>
import jax
import jax.numpy as jnp
from jax.experimental import pallas as pl
from jax.experimental.pallas import tpu as pltpu


def _softplus(v):
    # == torch.nn.functional.softplus (numerically stable)
    return jnp.logaddexp(v, 0.0)


def _log_g(v):
    # log_g(x) = where(x >= 0, log(relu(x) + 0.5), -softplus(-x))
    return jnp.where(v >= 0, jnp.log(jnp.maximum(v, 0.0) + 0.5), -_softplus(-v))


def min_lstm_kernel(x_ref, h0_ref, w_ref, b_ref, tri_ref, o_ref):
    TB, S, D = x_ref.shape
    TH = h0_ref.shape[2]

    w = w_ref[0]                      # (D, 3*TH)  [W_f | W_i | W_h], possibly bf16
    bias = b_ref[0]                   # (1, 3*TH)  f32
    tri = tri_ref[...]                # (S, S)     tri[s,k] = 1 iff k <= s   (f32)

    # tri_a derived in-kernel (was an extra S x S input + its double buffer):
    # tri_a[s,k] = 1 iff (k <= s+1 and s <= S-2)  == roll(tri, -1, axis=0) with
    # the last row zeroed.  Cheap VPU work, zero HBM/VMEM cost.
    row = jax.lax.broadcasted_iota(jnp.int32, (S, S), 0)
    col = jax.lax.broadcasted_iota(jnp.int32, (S, S), 1)
    tri_a = jnp.where((col <= row + 1) & (row <= S - 2), 1.0, 0.0)

    # --- single fused 3-gate projection for all TB batch rows (one MXU pass) ---
    x2 = x_ref[...].reshape(TB * S, D)
    proj = jnp.dot(x2, w, preferred_element_type=jnp.float32) + bias   # (TB*S, 3TH) f32
    f = proj[:, :TH]
    i = proj[:, TH:2 * TH]
    g = proj[:, 2 * TH:]

    # --- gate logs (EUP-reduced) ---
    diff = _softplus(-f) - _softplus(-i)
    log_f = -_softplus(diff)                       # (TB*S, TH)
    log_i = diff + log_f                           # == -softplus(-diff), no extra EUP pass
    log_th = _log_g(g)
    lith = (log_i + log_th).reshape(TB, S, TH)
    log_f3 = log_f.reshape(TB, S, TH)
    log_h0 = _log_g(h0_ref[...].astype(jnp.float32))   # (TB, 1, TH)

    # --- per-batch-row parallel scan via triangular prefix matmuls (f32) ---
    for b in range(TB):                # TB is small and static
        lf = log_f3[b]                                                   # (S, TH)
        # ash[s] = a_{s+1}: cumsum(log_f) shifted to output indexing, last row 0.
        ash = jnp.dot(tri_a, lf, preferred_element_type=jnp.float32)     # (S, TH)
        zb = lith[b] - ash                                               # z_{s+1}
        z0 = log_h0[b] - lf[0:1, :]                                      # z_0 = log_h0 - a_0
        m = jnp.maximum(jnp.max(zb, axis=0, keepdims=True), z0)          # (1, TH)
        e = jnp.exp(zb - m)
        ce = jnp.dot(tri, e, preferred_element_type=jnp.float32)         # prefix sums
        # h[s] = exp(a_{s+1}) * ( exp(z0) + sum_{k<=s} exp(zb[k]) )
        out = jnp.exp(ash + m) * (ce + jnp.exp(z0 - m))
        o_ref[b] = out.astype(o_ref.dtype)


def min_lstm_cell(x, pre_h, params, *, proj_dtype=jnp.bfloat16, out_dtype=None, tb=None):
    """x: (B, S, D), pre_h: (B, 1, H) -> h: (B, S, H).

    Weights are stored pre-transposed as (D, H): the kernel computes x @ W + b
    (== PyTorch x @ W.T + b).  proj_dtype controls the MXU projection dtype
    (bf16 by default; gate math and the prefix matmuls are always f32).
    """
    wf, bf, wi, bi, wh, bh = params
    B, S, D = x.shape
    H = wf.shape[1]
    out_dtype = x.dtype if out_dtype is None else out_dtype

    # --- pad H to a multiple of 128: lane-dense stores, clean TH slices ---
    H_pad = ((H + 127) // 128) * 128

    def pad_h(a):
        return a if H_pad == H else jnp.pad(a, [(0, 0)] * (a.ndim - 1) + [(0, H_pad - H)])

    wf, wi, wh = pad_h(wf), pad_h(wi), pad_h(wh)
    bf, bi, bh = pad_h(bf), pad_h(bi), pad_h(bh)
    pre_h_p = pad_h(pre_h)

    # Lane-dense hidden tile.  128 is safe on every generation (v5e's MXU is
    # 128 wide; on v7x it halves the (S, TH) intermediates against 64 MiB
    # VMEM).  Use 256 only for short sequences where the footprint is tiny.
    TH = 256 if (H_pad % 256 == 0 and S <= 256) else 128
    NJ = H_pad // TH

    # --- fused per-H-tile weight/bias slabs: [W_f | W_i | W_h] per tile ---
    def tile_w(w):  # (D, H_pad) -> (NJ, D, TH)
        return jnp.transpose(w.reshape(D, NJ, TH), (1, 0, 2))

    def tile_b(b):  # (1, H_pad) -> (NJ, 1, TH)
        return jnp.transpose(b.reshape(1, NJ, TH), (1, 0, 2))

    w_fused = jnp.concatenate([tile_w(wf), tile_w(wi), tile_w(wh)], axis=2).astype(proj_dtype)
    b_fused = jnp.concatenate([tile_b(bf), tile_b(bi), tile_b(bh)], axis=2).astype(jnp.float32)
    x_in = x.astype(proj_dtype) if x.dtype != jnp.dtype(proj_dtype) else x

    # Hoisted inclusive-prefix mask (VMEM-resident: constant index_map).
    r = jnp.arange(S)[:, None]
    c = jnp.arange(S)[None, :]
    tri = (c <= r).astype(jnp.float32)

    # --- batch tile: amortize weight-slab DMA, fatten the MXU M dim ---
    x_itm = jnp.dtype(x_in.dtype).itemsize
    w_itm = jnp.dtype(proj_dtype).itemsize
    o_itm = jnp.dtype(out_dtype).itemsize
    h_itm = jnp.dtype(pre_h_p.dtype).itemsize
    if tb is None:
        budget = 24 * 1024 * 1024                      # per-step live budget (v7x-safe)
        per_b = 4 * S * 12 * TH + 2 * S * D * x_itm    # ~12 live (S,TH) f32 + x block
        tb = max(1, min(B, max(1, 256 // S), max(1, budget // max(per_b, 1))))
    while B % tb:
        tb -= 1
    # Keep >= 2 grid points when possible so v7x's two TensorCores both work.
    if NJ * (B // tb) < 2 <= B:
        tb = max(1, B // 2)
        while B % tb:
            tb -= 1
    TB = tb
    nb = B // TB

    # --- grid order: keep the LARGER operand resident along the inner axis ---
    x_resident = TB * S * D * x_itm >= D * 3 * TH * w_itm
    if x_resident:
        grid = (nb, NJ)
        bidx = lambda g0, g1: g0
        jidx = lambda g0, g1: g1
    else:
        grid = (NJ, nb)
        bidx = lambda g0, g1: g1
        jidx = lambda g0, g1: g0

    # --- VMEM estimate / generation-aware scoped limit ---
    blocks = 2 * (TB * S * D * x_itm + D * 3 * TH * w_itm + 3 * TH * 4
                  + TB * TH * h_itm + TB * S * TH * o_itm) + 2 * S * S * 4
    interm = 4 * (TB * S * 12 * TH + 2 * S * S + 6 * S * TH)
    vmem_est = int(1.25 * (blocks + interm))
    cp_kwargs = dict(dimension_semantics=("parallel", "parallel"))
    if vmem_est > 16 * 1024 * 1024:                    # v5e's scoped default is 16 MiB
        try:
            phys = int(pltpu.get_tpu_info().vmem_capacity_bytes)
        except Exception:
            phys = 64 * 1024 * 1024                    # conservative: v7x per-core VMEM
        cap = int(0.85 * phys)                         # leave compiler headroom
        cp_kwargs["vmem_limit_bytes"] = min(max(vmem_est, 32 * 1024 * 1024), cap)
    compiler_params = pltpu.CompilerParams(**cp_kwargs)

    out = pl.pallas_call(
        min_lstm_kernel,
        out_shape=jax.ShapeDtypeStruct((B, S, H_pad), out_dtype),
        grid=grid,
        in_specs=[
            pl.BlockSpec((TB, S, D), lambda g0, g1: (bidx(g0, g1), 0, 0)),              # x
            pl.BlockSpec((TB, 1, TH), lambda g0, g1: (bidx(g0, g1), 0, jidx(g0, g1))),  # pre_h
            pl.BlockSpec((1, D, 3 * TH), lambda g0, g1: (jidx(g0, g1), 0, 0)),          # weights
            pl.BlockSpec((1, 1, 3 * TH), lambda g0, g1: (jidx(g0, g1), 0, 0)),          # bias
            pl.BlockSpec((S, S), lambda g0, g1: (0, 0)),                                # tri
        ],
        out_specs=pl.BlockSpec((TB, S, TH), lambda g0, g1: (bidx(g0, g1), 0, jidx(g0, g1))),
        compiler_params=compiler_params,
    )(x_in, pre_h_p, w_fused, b_fused, tri)

    return out[..., :H] if H_pad != H else out


def ref_min_lstm(x, pre_h, params):
    """Pure-JAX reference mirroring the PyTorch module."""
    wf, bf, wi, bi, wh, bh = params
    f = x @ wf + bf
    i = x @ wi + bi
    g = x @ wh + bh
    diff = _softplus(-f) - _softplus(-i)
    log_f = -_softplus(diff)
    log_i = -_softplus(-diff)
    log_values = jnp.concatenate([_log_g(pre_h), log_i + _log_g(g)], axis=1)
    a_star = jnp.pad(jnp.cumsum(log_f, axis=1), ((0, 0), (0, 1), (0, 0)))
    lcse = jax.lax.associative_scan(jnp.logaddexp, log_values - a_star, axis=1)
    log_h = a_star + lcse
    return jnp.exp(log_h)[:, 1:]


if __name__ == "__main__":
    B, S, D, H = 2, 8, 32, 32
    key = jax.random.PRNGKey(0)
    keys = jax.random.split(key, 8)
    bound = 1.0 / (D ** 0.5)  # nn.Linear default uniform init bound
    wf = jax.random.uniform(keys[0], (D, H), jnp.float32, -bound, bound)
    bf = jax.random.uniform(keys[1], (1, H), jnp.float32, -bound, bound)
    wi = jax.random.uniform(keys[2], (D, H), jnp.float32, -bound, bound)
    bi = jax.random.uniform(keys[3], (1, H), jnp.float32, -bound, bound)
    wh = jax.random.uniform(keys[4], (D, H), jnp.float32, -bound, bound)
    bh = jax.random.uniform(keys[5], (1, H), jnp.float32, -bound, bound)
    params = (wf, bf, wi, bi, wh, bh)

    x = jax.random.normal(keys[6], (B, S, D), jnp.float32)
    pre_h = jax.random.normal(keys[7], (B, 1, H), jnp.float32)

    ref = ref_min_lstm(x, pre_h, params)

    # f32 projection path: tight check against the pure-JAX reference.
    out_f32 = jax.block_until_ready(min_lstm_cell(x, pre_h, params, proj_dtype=jnp.float32))
    assert out_f32.shape == (B, S, H), out_f32.shape
    err_f32 = float(jnp.max(jnp.abs(out_f32 - ref)))
    assert jnp.allclose(out_f32, ref, atol=2e-5, rtol=2e-5), f"f32 max_err={err_f32}"

    # bf16 projection path (default): looser tolerance (bf16 MXU inputs).
    out_bf16 = jax.block_until_ready(min_lstm_cell(x, pre_h, params))
    err_bf16 = float(jnp.max(jnp.abs(out_bf16.astype(jnp.float32) - ref)))
    assert jnp.allclose(out_bf16.astype(jnp.float32), ref, atol=1e-1, rtol=1e-1), \
        f"bf16 max_err={err_bf16}"

    print("KERNEL_OK")
</pallas_src>

<mosaic_0001>
module attributes {stable_mosaic.version = 11 : i64} {
  func.func @min_lstm_kernel(%arg0: i32, %arg1: i32, %arg2: memref<1x8x32xf32, #tpu.memory_space<vmem>>, %arg3: memref<1x1x128xf32, #tpu.memory_space<vmem>>, %arg4: memref<1x32x384xf32, #tpu.memory_space<vmem>>, %arg5: memref<1x1x384xf32, #tpu.memory_space<vmem>>, %arg6: memref<8x8xf32, #tpu.memory_space<vmem>>, %arg7: memref<1x8x128xf32, #tpu.memory_space<vmem>>) attributes {dimension_semantics = [#tpu.dimension_semantics<parallel>, #tpu.dimension_semantics<parallel>], iteration_bounds = array<i64: 1, 2>, scalar_prefetch = 0 : i64, scratch_operands = 0 : i64, tpu.core_type = #tpu.core_type<tc>, window_params = [{transform_indices = @transform_0, window_bounds = array<i64: 1, 8, 32>}, {transform_indices = @transform_1, window_bounds = array<i64: 1, 1, 128>}, {transform_indices = @transform_2, window_bounds = array<i64: 1, 32, 384>}, {transform_indices = @transform_3, window_bounds = array<i64: 1, 1, 384>}, {pipeline_mode = #tpu.pipeline_mode<synchronous>, transform_indices = @transform_4, window_bounds = array<i64: 8, 8>}, {transform_indices = @transform_5, window_bounds = array<i64: 1, 8, 128>}]} {
    %c0 = arith.constant 0 : index
    %c0_0 = arith.constant 0 : index
    %c0_1 = arith.constant 0 : index
    %0 = vector.load %arg4[%c0, %c0_0, %c0_1] : memref<1x32x384xf32, #tpu.memory_space<vmem>>, vector<1x32x384xf32>
    %1 = vector.shape_cast %0 : vector<1x32x384xf32> to vector<32x384xf32>
    %c0_2 = arith.constant 0 : index
    %c0_3 = arith.constant 0 : index
    %c0_4 = arith.constant 0 : index
    %2 = vector.load %arg5[%c0_2, %c0_3, %c0_4] : memref<1x1x384xf32, #tpu.memory_space<vmem>>, vector<1x1x384xf32>
    %3 = vector.shape_cast %2 : vector<1x1x384xf32> to vector<1x384xf32>
    %c0_5 = arith.constant 0 : index
    %c0_6 = arith.constant 0 : index
    %4 = vector.load %arg6[%c0_5, %c0_6] : memref<8x8xf32, #tpu.memory_space<vmem>>, vector<8x8xf32>
    %5 = tpu.iota {dimensions = array<i32: 0>} : vector<8x8xi32>
    %6 = tpu.iota {dimensions = array<i32: 1>} : vector<8x8xi32>
    %c1_i32 = arith.constant 1 : i32
    %7 = vector.broadcast %c1_i32 : i32 to vector<8x8xi32>
    %8 = arith.addi %5, %7 : vector<8x8xi32>
    %9 = arith.cmpi sle, %6, %8 : vector<8x8xi32>
    %c6_i32 = arith.constant 6 : i32
    %10 = vector.broadcast %c6_i32 : i32 to vector<8x8xi32>
    %11 = arith.cmpi sle, %5, %10 : vector<8x8xi32>
    %12 = arith.andi %9, %11 : vector<8x8xi1>
    %cst = arith.constant 1.000000e+00 : f32
    %cst_7 = arith.constant 0.000000e+00 : f32
    %13 = vector.broadcast %cst : f32 to vector<8x8xf32>
    %14 = vector.broadcast %cst_7 : f32 to vector<8x8xf32>
    %15 = arith.select %12, %13, %14 : vector<8x8xi1>, vector<8x8xf32>
    %c0_8 = arith.constant 0 : index
    %c0_9 = arith.constant 0 : index
    %c0_10 = arith.constant 0 : index
    %16 = vector.load %arg2[%c0_8, %c0_9, %c0_10] : memref<1x8x32xf32, #tpu.memory_space<vmem>>, vector<1x8x32xf32>
    %17 = vector.shape_cast %16 : vector<1x8x32xf32> to vector<8x32xf32>
    %cst_11 = arith.constant dense<0.000000e+00> : vector<8x384xf32>
    %18 = tpu.matmul %17, %1, %cst_11 {dimension_numbers = #tpu.dot_dimension_numbers<[1], [0], [0], [1], [0, 0, 1, 1], [], []>} : vector<8x32xf32>, vector<32x384xf32>, vector<8x384xf32> -> vector<8x384xf32>
    %19 = vector.broadcast %3 : vector<1x384xf32> to vector<8x384xf32>
    %20 = arith.addf %18, %19 : vector<8x384xf32>
    %21 = vector.extract_strided_slice %20 {offsets = [0, 0], sizes = [8, 128], strides = [1, 1]} : vector<8x384xf32> to vector<8x128xf32>
    %22 = vector.extract_strided_slice %20 {offsets = [0, 128], sizes = [8, 128], strides = [1, 1]} : vector<8x384xf32> to vector<8x128xf32>
    %23 = vector.extract_strided_slice %20 {offsets = [0, 256], sizes = [8, 128], strides = [1, 1]} : vector<8x384xf32> to vector<8x128xf32>
    %cst_12 = arith.constant 0.000000e+00 : f32
    %24 = vector.broadcast %cst_12 : f32 to vector<8x128xf32>
    %25 = arith.subf %24, %21 : vector<8x128xf32>
    %cst_13 = arith.constant 0.000000e+00 : f32
    %26 = vector.broadcast %cst_13 : f32 to vector<8x128xf32>
    %27 = arith.maximumf %25, %26 : vector<8x128xf32>
    %28 = vector.broadcast %cst_13 : f32 to vector<8x128xf32>
    %29 = arith.subf %25, %28 : vector<8x128xf32>
    %30 = arith.cmpf one, %29, %29 : vector<8x128xf32>
    %31 = vector.broadcast %cst_13 : f32 to vector<8x128xf32>
    %32 = arith.addf %25, %31 : vector<8x128xf32>
    %33 = math.absf %29 : vector<8x128xf32>
    %cst_14 = arith.constant 0.000000e+00 : f32
    %34 = vector.broadcast %cst_14 : f32 to vector<8x128xf32>
    %35 = arith.subf %34, %33 : vector<8x128xf32>
    %36 = math.exp %35 : vector<8x128xf32>
    %37 = math.log1p %36 : vector<8x128xf32>
    %38 = arith.addf %27, %37 : vector<8x128xf32>
    %39 = arith.select %30, %32, %38 : vector<8x128xi1>, vector<8x128xf32>
    %cst_15 = arith.constant 0.000000e+00 : f32
    %40 = vector.broadcast %cst_15 : f32 to vector<8x128xf32>
    %41 = arith.subf %40, %22 : vector<8x128xf32>
    %cst_16 = arith.constant 0.000000e+00 : f32
    %42 = vector.broadcast %cst_16 : f32 to vector<8x128xf32>
    %43 = arith.maximumf %41, %42 : vector<8x128xf32>
    %44 = vector.broadcast %cst_16 : f32 to vector<8x128xf32>
    %45 = arith.subf %41, %44 : vector<8x128xf32>
    %46 = arith.cmpf one, %45, %45 : vector<8x128xf32>
    %47 = vector.broadcast %cst_16 : f32 to vector<8x128xf32>
    %48 = arith.addf %41, %47 : vector<8x128xf32>
    %49 = math.absf %45 : vector<8x128xf32>
    %cst_17 = arith.constant 0.000000e+00 : f32
    %50 = vector.broadcast %cst_17 : f32 to vector<8x128xf32>
    %51 = arith.subf %50, %49 : vector<8x128xf32>
    %52 = math.exp %51 : vector<8x128xf32>
    %53 = math.log1p %52 : vector<8x128xf32>
    %54 = arith.addf %43, %53 : vector<8x128xf32>
    %55 = arith.select %46, %48, %54 : vector<8x128xi1>, vector<8x128xf32>
    %56 = arith.subf %39, %55 : vector<8x128xf32>
    %cst_18 = arith.constant 0.000000e+00 : f32
    %57 = vector.broadcast %cst_18 : f32 to vector<8x128xf32>
    %58 = arith.maximumf %56, %57 : vector<8x128xf32>
    %59 = vector.broadcast %cst_18 : f32 to vector<8x128xf32>
    %60 = arith.subf %56, %59 : vector<8x128xf32>
    %61 = arith.cmpf one, %60, %60 : vector<8x128xf32>
    %62 = vector.broadcast %cst_18 : f32 to vector<8x128xf32>
    %63 = arith.addf %56, %62 : vector<8x128xf32>
    %64 = math.absf %60 : vector<8x128xf32>
    %cst_19 = arith.constant 0.000000e+00 : f32
    %65 = vector.broadcast %cst_19 : f32 to vector<8x128xf32>
    %66 = arith.subf %65, %64 : vector<8x128xf32>
    %67 = math.exp %66 : vector<8x128xf32>
    %68 = math.log1p %67 : vector<8x128xf32>
    %69 = arith.addf %58, %68 : vector<8x128xf32>
    %70 = arith.select %61, %63, %69 : vector<8x128xi1>, vector<8x128xf32>
    %cst_20 = arith.constant 0.000000e+00 : f32
    %71 = vector.broadcast %cst_20 : f32 to vector<8x128xf32>
    %72 = arith.subf %71, %70 : vector<8x128xf32>
    %73 = arith.addf %56, %72 : vector<8x128xf32>
    %cst_21 = arith.constant 0.000000e+00 : f32
    %74 = vector.broadcast %cst_21 : f32 to vector<8x128xf32>
    %75 = arith.cmpf oge, %23, %74 : vector<8x128xf32>
    %cst_22 = arith.constant 0.000000e+00 : f32
    %76 = vector.broadcast %cst_22 : f32 to vector<8x128xf32>
    %77 = arith.maximumf %23, %76 : vector<8x128xf32>
    %cst_23 = arith.constant 5.000000e-01 : f32
    %78 = vector.broadcast %cst_23 : f32 to vector<8x128xf32>
    %79 = arith.addf %77, %78 : vector<8x128xf32>
    %80 = math.log %79 : vector<8x128xf32>
    %cst_24 = arith.constant 0.000000e+00 : f32
    %81 = vector.broadcast %cst_24 : f32 to vector<8x128xf32>
    %82 = arith.subf %81, %23 : vector<8x128xf32>
    %cst_25 = arith.constant 0.000000e+00 : f32
    %83 = vector.broadcast %cst_25 : f32 to vector<8x128xf32>
    %84 = arith.maximumf %82, %83 : vector<8x128xf32>
    %85 = vector.broadcast %cst_25 : f32 to vector<8x128xf32>
    %86 = arith.subf %82, %85 : vector<8x128xf32>
    %87 = arith.cmpf one, %86, %86 : vector<8x128xf32>
    %88 = vector.broadcast %cst_25 : f32 to vector<8x128xf32>
    %89 = arith.addf %82, %88 : vector<8x128xf32>
    %90 = math.absf %86 : vector<8x128xf32>
    %cst_26 = arith.constant 0.000000e+00 : f32
    %91 = vector.broadcast %cst_26 : f32 to vector<8x128xf32>
    %92 = arith.subf %91, %90 : vector<8x128xf32>
    %93 = math.exp %92 : vector<8x128xf32>
    %94 = math.log1p %93 : vector<8x128xf32>
    %95 = arith.addf %84, %94 : vector<8x128xf32>
    %96 = arith.select %87, %89, %95 : vector<8x128xi1>, vector<8x128xf32>
    %cst_27 = arith.constant 0.000000e+00 : f32
    %97 = vector.broadcast %cst_27 : f32 to vector<8x128xf32>
    %98 = arith.subf %97, %96 : vector<8x128xf32>
    %99 = arith.select %75, %80, %98 : vector<8x128xi1>, vector<8x128xf32>
    %100 = arith.addf %73, %99 : vector<8x128xf32>
    %101 = vector.shape_cast %100 : vector<8x128xf32> to vector<1x8x128xf32>
    %102 = vector.shape_cast %72 : vector<8x128xf32> to vector<1x8x128xf32>
    %c0_28 = arith.constant 0 : index
    %c0_29 = arith.constant 0 : index
    %c0_30 = arith.constant 0 : index
    %103 = vector.load %arg3[%c0_28, %c0_29, %c0_30] : memref<1x1x128xf32, #tpu.memory_space<vmem>>, vector<1x1x128xf32>
    %cst_31 = arith.constant 0.000000e+00 : f32
    %104 = vector.broadcast %cst_31 : f32 to vector<1x1x128xf32>
    %105 = arith.cmpf oge, %103, %104 : vector<1x1x128xf32>
    %cst_32 = arith.constant 0.000000e+00 : f32
    %106 = vector.broadcast %cst_32 : f32 to vector<1x1x128xf32>
    %107 = arith.maximumf %103, %106 : vector<1x1x128xf32>
    %cst_33 = arith.constant 5.000000e-01 : f32
    %108 = vector.broadcast %cst_33 : f32 to vector<1x1x128xf32>
    %109 = arith.addf %107, %108 : vector<1x1x128xf32>
    %110 = math.log %109 : vector<1x1x128xf32>
    %cst_34 = arith.constant 0.000000e+00 : f32
    %111 = vector.broadcast %cst_34 : f32 to vector<1x1x128xf32>
    %112 = arith.subf %111, %103 : vector<1x1x128xf32>
    %cst_35 = arith.constant 0.000000e+00 : f32
    %113 = vector.broadcast %cst_35 : f32 to vector<1x1x128xf32>
    %114 = arith.maximumf %112, %113 : vector<1x1x128xf32>
    %115 = vector.broadcast %cst_35 : f32 to vector<1x1x128xf32>
    %116 = arith.subf %112, %115 : vector<1x1x128xf32>
    %117 = arith.cmpf one, %116, %116 : vector<1x1x128xf32>
    %118 = vector.broadcast %cst_35 : f32 to vector<1x1x128xf32>
    %119 = arith.addf %112, %118 : vector<1x1x128xf32>
    %120 = math.absf %116 : vector<1x1x128xf32>
    %cst_36 = arith.constant 0.000000e+00 : f32
    %121 = vector.broadcast %cst_36 : f32 to vector<1x1x128xf32>
    %122 = arith.subf %121, %120 : vector<1x1x128xf32>
    %123 = math.exp %122 : vector<1x1x128xf32>
    %124 = math.log1p %123 : vector<1x1x128xf32>
    %125 = arith.addf %114, %124 : vector<1x1x128xf32>
    %126 = arith.select %117, %119, %125 : vector<1x1x128xi1>, vector<1x1x128xf32>
    %cst_37 = arith.constant 0.000000e+00 : f32
    %127 = vector.broadcast %cst_37 : f32 to vector<1x1x128xf32>
    %128 = arith.subf %127, %126 : vector<1x1x128xf32>
    %129 = arith.select %105, %110, %128 : vector<1x1x128xi1>, vector<1x1x128xf32>
    %130 = vector.shape_cast %102 : vector<1x8x128xf32> to vector<8x128xf32>
    %cst_38 = arith.constant dense<0.000000e+00> : vector<8x128xf32>
    %131 = tpu.matmul %15, %130, %cst_38 {dimension_numbers = #tpu.dot_dimension_numbers<[1], [0], [0], [1], [0, 0, 1, 1], [], []>} : vector<8x8xf32>, vector<8x128xf32>, vector<8x128xf32> -> vector<8x128xf32>
    %132 = vector.shape_cast %101 : vector<1x8x128xf32> to vector<8x128xf32>
    %133 = arith.subf %132, %131 : vector<8x128xf32>
    %134 = vector.shape_cast %129 : vector<1x1x128xf32> to vector<1x128xf32>
    %135 = vector.extract_strided_slice %130 {offsets = [0, 0], sizes = [1, 128], strides = [1, 1]} : vector<8x128xf32> to vector<1x128xf32>
    %136 = arith.subf %134, %135 : vector<1x128xf32>
    %cst_39 = arith.constant dense<0xFF800000> : vector<128xf32>
    %137 = vector.multi_reduction <maximumf>, %133, %cst_39 [0] : vector<8x128xf32> to vector<128xf32>
    %138 = vector.shape_cast %137 : vector<128xf32> to vector<1x128xf32>
    %139 = arith.maximumf %138, %136 : vector<1x128xf32>
    %140 = vector.broadcast %139 : vector<1x128xf32> to vector<8x128xf32>
    %141 = arith.subf %133, %140 : vector<8x128xf32>
    %142 = math.exp %141 : vector<8x128xf32>
    %cst_40 = arith.constant dense<0.000000e+00> : vector<8x128xf32>
    %143 = tpu.matmul %4, %142, %cst_40 {dimension_numbers = #tpu.dot_dimension_numbers<[1], [0], [0], [1], [0, 0, 1, 1], [], []>} : vector<8x8xf32>, vector<8x128xf32>, vector<8x128xf32> -> vector<8x128xf32>
    %144 = vector.broadcast %139 : vector<1x128xf32> to vector<8x128xf32>
    %145 = arith.addf %131, %144 : vector<8x128xf32>
    %146 = math.exp %145 : vector<8x128xf32>
    %147 = arith.subf %136, %139 : vector<1x128xf32>
    %148 = math.exp %147 : vector<1x128xf32>
    %149 = vector.broadcast %148 : vector<1x128xf32> to vector<8x128xf32>
    %150 = arith.addf %143, %149 : vector<8x128xf32>
    %151 = arith.mulf %146, %150 : vector<8x128xf32>
    %c0_41 = arith.constant 0 : index
    %c0_42 = arith.constant 0 : index
    %c0_43 = arith.constant 0 : index
    %152 = vector.load %arg7[%c0_41, %c0_42, %c0_43] : memref<1x8x128xf32, #tpu.memory_space<vmem>>, vector<1x8x128xf32>
    %153 = vector.shape_cast %152 : vector<1x8x128xf32> to vector<8x128xf32>
    %154 = vector.shape_cast %151 : vector<8x128xf32> to vector<1x8x128xf32>
    tpu.vector_store %arg7[%c0_41, %c0_42, %c0_43], %154 {strides = array<i32>} : memref<1x8x128xf32, #tpu.memory_space<vmem>>, vector<1x8x128xf32>,
    return
  }
  func.func @transform_0(%arg0: i32, %arg1: i32) -> (i32, i32, i32) {
    %c0_i32 = arith.constant 0 : i32
    %c0_i32_0 = arith.constant 0 : i32
    %c0_i32_1 = arith.constant 0 : i32
    return %arg1, %c0_i32, %c0_i32_0 : i32, i32, i32
  }
  func.func @transform_1(%arg0: i32, %arg1: i32) -> (i32, i32, i32) {
    %c0_i32 = arith.constant 0 : i32
    %c0_i32_0 = arith.constant 0 : i32
    return %arg1, %c0_i32, %arg0 : i32, i32, i32
  }
  func.func @transform_2(%arg0: i32, %arg1: i32) -> (i32, i32, i32) {
    %c0_i32 = arith.constant 0 : i32
    %c0_i32_0 = arith.constant 0 : i32
    %c0_i32_1 = arith.constant 0 : i32
    return %arg0, %c0_i32, %c0_i32_0 : i32, i32, i32
  }
  func.func @transform_3(%arg0: i32, %arg1: i32) -> (i32, i32, i32) {
    %c0_i32 = arith.constant 0 : i32
    %c0_i32_0 = arith.constant 0 : i32
    %c0_i32_1 = arith.constant 0 : i32
    return %arg0, %c0_i32, %c0_i32_0 : i32, i32, i32
  }
  func.func @transform_4(%arg0: i32, %arg1: i32) -> (i32, i32) {
    %c0_i32 = arith.constant 0 : i32
    %c0_i32_0 = arith.constant 0 : i32
    %c0_i32_1 = arith.constant 0 : i32
    return %c0_i32, %c0_i32_0 : i32, i32
  }
  func.func @transform_5(%arg0: i32, %arg1: i32) -> (i32, i32, i32) {
    %c0_i32 = arith.constant 0 : i32
    %c0_i32_0 = arith.constant 0 : i32
    return %arg1, %c0_i32, %arg0 : i32, i32, i32
  }
}

</mosaic_0001>

<bundles_post_ra>
// kernel: tpu_custom_call.1
= control target key start
LH: loop header
LB: loop body
LE: loop exit
PB: predicated region body
PF: predicated region fallthrough
CT: control target
= control target key end

     0   :  { %10 = vsyncpa [#allocation3], 0  ;;  %s1553_s0 = inlined_call_operand.hbm [shape: f32[2,8,32], index: 0, kind: input, shape index: {}]   ;;  %s1554_s1 = inlined_call_operand.vmem [shape: f32[2,1,128], index: 1, kind: input, shape index: {}]   ;;  %s1555_s2 = inlined_call_operand.hbm [shape: f32[1,32,384], index: 2, kind: input, shape index: {}]   ;;  %s1556_s3 = inlined_call_operand.vmem [shape: f32[1,1,384], index: 3, kind: input, shape index: {}]   ;;  %s1557_s4 = inlined_call_operand.vmem [shape: f32[8,8], index: 4, kind: input, shape index: {}]   ;;  %s1558_s5 = inlined_call_operand.hbm [shape: f32[2,8,128], index: 5, kind: output, shape index: {}]  }
   0x1   :  { %12 = vsyncpa [#allocation3 + $0x1], 0 }
   0x2   :  { %13 = vsyncpa [#allocation6], 0 }
   0x3   :  { %14 = vsyncpa [#allocation4], 0 }
   0x4   :  { %16 = vsyncpa [#allocation4 + $0x1], 0  ;;  %s1283_s18 = smov 0   ;;  %s1285_s19 = smov 0  }
   0x5   :  { %s1287_s20 = smov 0   ;;  %s1289_s21 = smov 0  }
   0x6   :  { %s1291_s22 = smov 0   ;;  %s1293_s23 = smov 0  }
   0x7 LB: > { %s927_s24 = sadd.s32 4294967295, %s1243_s23   ;;  %s928_s25 = sadd.s32 4294967294, %s1243_s23   ;;  %s1243_s23 = sphi %s1293_s23, %s22_s23   ;;  %s1239_s22 = sphi %s1291_s22, %s1582_s22   ;;  %s1235_s21 = sphi %s1289_s21, %s1581_s21   ;;  %s1231_s20 = sphi %s1287_s20, %s1580_s20   ;;  %s1227_s19 = sphi %s1285_s19, %s1579_s19   ;;  %s1223_s18 = sphi %s1283_s18, %s1578_s18  }
   0x8   : > { %p54_p0 = scmp.ne.s32.totalorder %s1227_s19, %s1223_s18  ;;  %p1317_p1 = scmp.eq.s32.totalorder %s927_s24, 0 }
   0x9   : > { %p1321_p2 = scmp.eq.s32.totalorder %s927_s24, 1  ;;  %p187_p3 = scmp.eq.s32.totalorder %s928_s25, 1 }
   0xa   : > { %s1563_s26 = scalar_select %p1317_p1, 1, 0 }
   0xb   : > { %s1564_s27 = scalar_select %p1321_p2, 1, 0 }
   0xc   : > { %p1327_p4 = por %p1317_p1, %p54_p0  ;;  %p929_p5 = scmp.ge.s32.totalorder %s1243_s23, 1 }
   0xd   : > { %p1332_p6 = por %p187_p3, %p54_p0  ;;  %p194_p7 = scmp.lt.s32.totalorder %s1243_s23, 3 }
   0xe   : > { %s1565_s28 = scalar_select %p1327_p4, 1, 0 }
   0xf   : > { %s1566_s29 = scalar_select %p1332_p6, 1, 0 }
  0x10   : > { %p1337_p8 = pnand %p929_p5, %p194_p7  ;;  %s1245_s6 = smov [#allocation5]  }
  0x11   : > { %s209_s7 = sshll.u32 %s1245_s6, 4  ;;  %s31_s9 = sadd.s32 1, %s1239_s22  ;;  %s210_s7 = int_to_ptr.vmem [resolvable:$true] %s209_s7 }
  0x12   : > { %s1567_s30 = scalar_select %p1337_p8, 1, 0 }
  0x13   : > { %p999_p9 = pneg %p1337_p8  ;;  %s1099_s12 = scalar_lea.hbm %s1555_s2, 1536 }
  0x14   : > { %p1100_p12 = scmp.ne.s32.totalorder %s1555_s2, %s1099_s12  ;;  %p1106_p5 = scmp.lt.u32.totalorder %s1099_s12, %s1555_s2 }
  0x15   : > { %p1346_p11 = pnand %p999_p9, %p1317_p1 }
  0x17   : > { %p1101_p13 = pneg %p1346_p11 }
  0x19   : > { %p1102_p0 = pnand %p1101_p13, %p1100_p12 }
  0x1b   : > { %p1103_p3 = pneg %p1102_p0 }
  0x1d   : > { %p1108_p7 = pnand %p1106_p5, %p1103_p3 }
  0x1f   : > { %1111 = shalt.err (!%p1108_p7)
}
  0x20   : > { %s1112_s17 = scalar_lea.vmem %s210_s7, 1536  ;;  %p1120_p1 = scmp.lt.s32.totalorder %s210_s7, %s210_s7 }
  0x21   : > { %p1113_p9 = scmp.ne.s32.totalorder %s210_s7, %s1112_s17  ;;  %p1121_p4 = scmp.lt.s32.totalorder %s1112_s17, %s1112_s17 }
  0x23   : > { %p1115_p10 = pnand %p1113_p9, %p1101_p13  ;;  %p1122_p8 = por %p1121_p4, %p1120_p1 }
  0x25   : > { %p1116_p6 = pneg %p1115_p10 }
  0x27   : > { %p1123_p2 = pnand %p1122_p8, %p1116_p6 }
  0x29   : > { %1126 = shalt.err (!%p1123_p2)
}
  0x2a   : > { %s1246_s24 = smov 384   ;;  %s1247_s25 = smov 24  }
  0x2b   : > { %1002 = dma.hbm_to_vmem [thread:$0]  (!%p1346_p11), %s1555_s2, 1536, %s210_s7, [#allocation6], %s1246_s24, %s1246_s24, %s1247_s25  }
  0x2c   : > { %p32_p1 = scmp.ge.s32.totalorder %s31_s9, 2  ;;  %s41_s11 = sadd.s32 1, %s1231_s20 }
  0x2d   : > { %p48_p2 = scmp.ne.s32.totalorder %s1231_s20, %s1227_s19  ;;  %p49_p4 = scmp.eq.s32.totalorder %s1243_s23, 0 }
  0x2e   : > { %s1584_s9 = smov (%p32_p1, %s31_s9), 0  ;;  %p1570_p8 = scmp.ne.s32.totalorder %s1564_s27, 0 }
  0x2f   : > { %p1373_p6 = por %p49_p4, %p48_p2  ;;  %s38_s8 = ssub.s32 %s1239_s22, %s1584_s9 }
  0x30   : > { %p1379_p10 = por %p1570_p8, %p48_p2  ;;  %p1012_p12 = scmp.lt.s32.totalorder %s1243_s23, 2 }
  0x31   : > { %p39_p11 = scmp.eq.s32.totalorder %s38_s8, 0  ;;  %s233_s7 = sand.u32 1, %s1231_s20  }
  0x32   : > { %s933_s14 = sshll.u32 %s233_s7, 3  ;;  %s934_s16 = sshll.u32 %s1239_s22, 7 }
  0x33   : > { %s1388_s15 = scalar_select %p39_p11, %s1231_s20, %s41_s11  }
  0x34   : > { %s1394_s25 = scalar_lea.hbm %s1553_s0, %s934_s16  ;;  %s237_s27 = scalar_lea.vmem [#allocation2], %s933_s14 }
  0x35   : > { %s244_s6 = sshll.u32 %s237_s27, 4  ;;  %p1400_p13 = pnand %p1012_p12, %p1373_p6  ;;  %s1396_s6 = int_to_ptr.vmem [resolvable:$true] %s244_s6 }
  0x36   : > { %s234_s11 = scalar_lea.sflag [#allocation3], %s233_s7  ;;  %s1127_s8 = scalar_lea.hbm %s1394_s25, 128 }
  0x37   : > { %p1128_p0 = scmp.ne.s32.totalorder %s1394_s25, %s1127_s8  ;;  %p1129_p3 = pneg %p1400_p13 }
  0x38   : > { %s1132_s17 = scalar_lea.hbm %s1553_s0, 256  ;;  %p1133_p9 = scmp.lt.u32.totalorder %s1394_s25, %s1553_s0 }
  0x39   : > { %p1130_p5 = pnand %p1129_p3, %p1128_p0  ;;  %p1134_p1 = scmp.lt.u32.totalorder %s1132_s17, %s1127_s8 }
  0x3a   : > { %p1136_p4 = scmp.lt.u32.totalorder %s1127_s8, %s1394_s25 }
  0x3b   : > { %p1131_p7 = pneg %p1130_p5  ;;  %p1135_p2 = por %p1134_p1, %p1133_p9 }
  0x3d   : > { %p1137_p6 = por %p1136_p4, %p1135_p2 }
  0x3f   : > { %p1138_p8 = pnand %p1137_p6, %p1131_p7 }
  0x41   : > { %1141 = shalt.err (!%p1138_p8)
}
  0x42   : > { %s1142_s7 = scalar_lea.vmem %s1396_s6, 128  ;;  %s1248_s27 = smov [#allocation2]  }
  0x43   : > { %p1143_p12 = scmp.ne.s32.totalorder %s1396_s6, %s1142_s7  ;;  %s1147_s14 = sshll.u32 %s1248_s27, 4  ;;  %s1148_s14 = int_to_ptr.vmem [resolvable:$false] %s1147_s14 }
  0x44   : > { %s1149_s16 = scalar_lea.vmem %s1148_s14, 256  ;;  %p1150_p5 = scmp.lt.s32.totalorder %s1396_s6, %s1148_s14 }
  0x45   : > { %p1145_p11 = pnand %p1143_p12, %p1129_p3  ;;  %p1151_p9 = scmp.lt.s32.totalorder %s1149_s16, %s1142_s7 }
  0x47   : > { %p1146_p0 = pneg %p1145_p11  ;;  %p1152_p1 = por %p1151_p9, %p1150_p5 }
  0x49   : > { %p1153_p2 = pnand %p1152_p1, %p1146_p0 }
  0x4b   : > { %1156 = shalt.err (!%p1153_p2)
}
  0x4c   : > { %1006 = dma.hbm_to_vmem [thread:$0]  (!%p1400_p13), %s1394_s25, 128, %s1396_s6, %s234_s11  }
  0x4d   : > { %p1573_p7 = scmp.ne.s32.totalorder %s1567_s30, 0 }
  0x4e   : > { %s1432_s8 = sand.u32 (!%p1573_p7), 1, %s1227_s19   ;;  %p1574_p3 = scmp.ne.s32.totalorder (!%p1573_p7), %s1565_s28, 0 }
  0x4f   : > { %262 = sbr.rel (%p1573_p7) target bundleno = 872 (0x368), region = 40  ;;  %s936_s17 = sshll.u32 (!%p1573_p7), %s1432_s8, 3 }
  0x50   : > { %s265_s12 = scalar_lea.sflag (!%p1573_p7), [#allocation3], %s1432_s8  ;;  %s1438_s24 = scalar_lea.vmem (!%p1573_p7), [#allocation2], %s936_s17 }
  0x56   : > { %1210 = dma.done.wait (%p1574_p3), %s265_s12, 128  }
  0x57   : > { %1212 = vsyncadd (%p1574_p3), %s265_s12, 4294967168  ;;  %p1575_p13 = scmp.ne.s32.totalorder %s1563_s26, 0 }
  0x59   : > { %1214 = dma.done.wait (%p1575_p13), [#allocation6], 1536  }
  0x5a   : > { %1216 = vsyncadd (%p1575_p13), [#allocation6], 4294965760  ;;  %v1249_v0 = vmov 0.0   ;;  %v1250_v1 = vmov 0.0|0.0   ;;  %vm1251_vm0 = vmmov 0   ;;  %v320_v2 = vld [vmem:[#allocation5 + $0x8] sm:$0xff]  ;;  %v333_v21 = vlaneseq }
  0x5b   : > { %427 = vmatprep.mubr.f32.mxu0 %v1249_v0  ;;  %985 = vmatprep.subr.bf16.mxu1 %v1250_v1  ;;  %v323_v3 = vld [vmem:[#allocation5 + $0x20] sm:$0xff]  ;;  %v322_v6 = vld [vmem:[#allocation5 + $0x18] sm:$0xff]  ;;  %v329_v8 = vld [vmem:[#allocation5 + $0x50] sm:$0xff]  ;;  %vm359_vm1 = vcmask 261120   ;;  %vm617_vm14 = vcmask 64512   ;;  %p309_p4 = scmp.lt.s32.totalorder %s1235_s21, 1 }
  0x5c   : > { %964 = vmatprep.mubr.msk.f32.mxu1 %vm1251_vm0, %v1249_v0  ;;  %v319_v4 = vld [vmem:[#allocation5] sm:$0xff]  ;;  %v977_v5 = vpack.c.bf16 %v323_v3, %v320_v2  ;;  %v326_v7 = vld [vmem:[#allocation5 + $0x38] sm:$0xff]  ;;  %v325_v11 = vld [vmem:[#allocation5 + $0x30] sm:$0xff]  ;;  %v1459_v22 = vshrl.u32 %v333_v21, 7  ;;  %s944_s27 = sshll.u32 %s1235_s21, 7  ;;  %s308_s14 = scalar_lea.vmem [#allocation7], %s936_s17 }
  0x5d   : > { %v979_v9 = vpack.c.bf16 %v322_v6, %v319_v4  ;;  %v981_v10 = vpack.c.bf16 %v329_v8, %v326_v7  ;;  %v328_v12 = vld [vmem:[#allocation5 + $0x48] sm:$0xff]  ;;  %v321_v13 = vld [vmem:[#allocation5 + $0x10] sm:$0xff]  ;;  %v327_v15 = vld [vmem:[#allocation5 + $0x40] sm:$0xff]  ;;  %s310_s30 = scalar_select %p309_p4, %s1235_s21, 1 }
  0x5e   : > { %978 = vmatprep.subr.bf16.mxu0 %v977_v5  ;;  %v324_v14 = vld [vmem:[#allocation5 + $0x28] sm:$0xff]  ;;  %v983_v16 = vpack.c.bf16 %v328_v12, %v325_v11  ;;  %v330_v18 = vld [vmem:[#allocation5 + $0x58] sm:$0xff]  ;;  %v1462_v23 = vsub.s32 0, %v1459_v22  ;;  %v331_v24 = vld [vmem:[%s1556_s3] sm:$0x7]  ;;  %v350_v25 = vsub.s32 1, %v1459_v22  ;;  %s1504_s26 = scalar_lea.hbm %s1558_s5, %s944_s27 }
  0x5f   : > { %980 = vmatpush1.bf16.msra.mxu0 %v979_v9  ;;  %v986_v17 = vpack.c.bf16 %v324_v14, %v321_v13  ;;  %v989_v19 = vpack.c.bf16 %v330_v18, %v327_v15  ;;  %v342_v20 = vld [vmem:[%s1438_s24] sm:$0xff]  ;;  %v354_v36 = vsub.s32 2, %v1459_v22  ;;  %vm339_vm9 = vcmp.le.s32.totalorder %v1459_v22, 6  ;;  %s314_s10 = scalar_lea.vmem %s1554_s1, %s310_s30  ;;  %s809_s16 = sshll.u32 %s308_s14, 4  ;;  %s1506_s16 = int_to_ptr.vmem [resolvable:$true] %s809_s16 }
  0x60   : > { %982 = vmatprep.subr.bf16.mxu0 %v981_v10  ;;  %v347_v26 = vrot.slane %v331_v24, %v1462_v23  ;;  %v351_v27 = vrot.slane %v331_v24, %v350_v25  ;;  %s795_s28 = scalar_lea.sflag [#allocation4], %s1432_s8  ;;  %s1157_s21 = scalar_lea.vmem %s1506_s16, 128 }
  0x61   : > { %987 = vmatpush3.bf16.msra.mxu1 %v986_v17  ;;  %v355_v41 = vrot.slane %v331_v24, %v354_v36  ;;  %p1158_p6 = scmp.ne.s32.totalorder %s1506_s16, %s1157_s21  ;;  %s1252_s17 = smov [#allocation7]  }
  0x62   : > { %988 = vmatprep.subr.bf16.mxu1 %v1250_v1  ;;  %s1161_s30 = sshll.u32 %s1252_s17, 4  ;;  %s1162_s30 = int_to_ptr.vmem [resolvable:$false] %s1161_s30 }
  0x63   : > { %984 = vmatpush1.bf16.msra.mxu0 %v983_v16  ;;  %p1159_p8 = pnand %p1158_p6, %p1379_p10  ;;  %s1163_s25 = scalar_lea.vmem %s1162_s30, 256 }
  0x64   : > { %967 = vmatprep.subr.mxu0 %v1249_v0  ;;  %p1164_p11 = scmp.lt.s32.totalorder %s1506_s16, %s1162_s30  ;;  %p1165_p0 = scmp.lt.s32.totalorder %s1163_s25, %s1157_s21 }
  0x65   : > { %990 = vmatpush3.bf16.msra.mxu1 %v989_v19  ;;  %p1160_p12 = pneg %p1159_p8 }
  0x66   : > { %939 = vmatmul.mubr.msk.f32.vlgmr.msra.gmra.mrb[0].mxu0 %vm359_vm1, %v342_v20  ;;  %972 = vmatprep.subr.mxu1 %v1249_v0  ;;  %p1166_p5 = por %p1165_p0, %p1164_p11 }
  0x67   : > { %969 = vmatprep.mubr.msk.f32.mxu0 %vm1251_vm0, %v1249_v0 }
  0x68   : > { %965 = vmatmul.mubr.msk.f32.vlgmr.msra.gmra.mrb[0].mxu1 %vm359_vm1, %v342_v20  ;;  %p1167_p9 = pnand %p1166_p5, %p1160_p12 }
  0x69   : > { %974 = vmatprep.mubr.msk.f32.mxu1 %vm1251_vm0, %v1249_v0 }
 0x139   : > { %v429_v28 = vpop.f32.mrb[0].mxu0 }
 0x13a   : > { %v430_v29 = vadd.f32 %v429_v28, %v347_v26  ;;  %v431_v30 = vpop.f32.mrb[1].mxu0 }
 0x13b   : > { %v432_v31 = vadd.f32 %v431_v30, %v351_v27  ;;  %v500_v32 = vpop.f32.mrb[0].mxu1 }
 0x13c   : > { %v504_v33 = vsub.f32 0.0, %v430_v29  ;;  %v966_v34 = vpop.f32.mrb[1].mxu1  ;;  %v1470_v44 = vadd.f32 %v500_v32, %v355_v41  ;;  %v336_v32 = vand.u32 127, %v333_v21 }
 0x13d   : > { %v523_v35 = vsub.f32 0.0, %v432_v31 }
 0x13e   : > { %v508_v37 = vand.u32 2147483647, %v504_v33  ;;  %v1473_v45 = vsub.f32 0.0, %v1470_v44  ;;  %v505_v63 = vmax.f32 %v504_v33, 0.0  ;;  %vm506_vm4 = vcmp.ne.f32.partialorder %v504_v33, %v504_v33 }
 0x13f   : > { %v527_v38 = vand.u32 2147483647, %v523_v35  ;;  %v524_v4 = vmax.f32 %v523_v35, 0.0  ;;  %vm525_vm5 = vcmp.ne.f32.partialorder %v523_v35, %v523_v35  ;;  %v564_v17 = vmax.f32 %v1470_v44, 0.0 }
 0x140   : > { %v509_v39 = vsub.f32 0.0, %v508_v37  ;;  %v572_v46 = vand.u32 2147483647, %v1473_v45  ;;  %v569_v29 = vmax.f32 %v1473_v45, 0.0  ;;  %vm570_vm7 = vcmp.ne.f32.partialorder %v1473_v45, %v1473_v45 }
 0x141   : > { %v528_v40 = vsub.f32 0.0, %v527_v38  ;;  %v565_v24 = vadd.f32 0.5, %v564_v17  ;;  %vm563_vm12 = vcmp.ge.f32.partialorder %v1470_v44, 0.0 }
 0x142   : > { %v510_v42 = vmul.f32 1.442695, %v509_v39  ;;  %v573_v51 = vsub.f32 0.0, %v572_v46 }
 0x143   : > { %v529_v43 = vmul.f32 1.442695, %v528_v40 }
 0x144   : > { %1069 = vpow2.f32 %v510_v42  ;;  %v574_v54 = vmul.f32 1.442695, %v573_v51 }
 0x145   : > { %1071 = vpow2.f32 %v529_v43 }
 0x14e   : > { %v1070_v47 = vpop.eup %1069 }
 0x14f   : > { %v1072_v48 = vpop.eup %1071  ;;  %v512_v49 = vadd.f32 1.0, %v1070_v47  ;;  %v515_v52 = vmul.f32 -0.5, %v1070_v47  ;;  %v518_v56 = vand.u32 2147483647, %v1070_v47 }
 0x150   : > { %v531_v50 = vadd.f32 1.0, %v1072_v48  ;;  %v534_v53 = vmul.f32 -0.5, %v1072_v48  ;;  %v537_v58 = vand.u32 2147483647, %v1072_v48 }
 0x151   : > { %1073 = vlog2.f32 %v512_v49  ;;  %v516_v55 = vadd.f32 1.0, %v515_v52  ;;  %vm519_vm2 = vcmp.lt.f32.partialorder %v518_v56, 0.0004427343  ;;  %v590_v52 = vld [vmem:[%s314_s10] sm:$0x1] }
 0x152   : > { %1075 = vlog2.f32 %v531_v50  ;;  %v535_v57 = vadd.f32 1.0, %v534_v53  ;;  %vm538_vm3 = vcmp.lt.f32.partialorder %v537_v58, 0.0004427343  ;;  %v596_v44 = vsub.f32 0.0, %v590_v52 }
 0x153   : > { %1077 = vpow2.f32 %v574_v54  ;;  %v517_v62 = vmul.f32 %v1070_v47, %v516_v55  ;;  %v592_v58 = vmax.f32 %v590_v52, 0.0  ;;  %vm591_vm1 = vcmp.ge.f32.partialorder %v590_v52, 0.0 }
 0x154   : > { %v536_v2 = vmul.f32 %v1072_v48, %v535_v57  ;;  %v600_v53 = vand.u32 2147483647, %v596_v44  ;;  %vm598_vm0 = vcmp.ne.f32.partialorder %v596_v44, %v596_v44 }
 0x156   : > { %v601_v54 = vsub.f32 0.0, %v600_v53 }
 0x158   : > { %v602_v55 = vmul.f32 1.442695, %v601_v54 }
 0x15b   : > { %v1074_v59 = vpop.eup %1073 }
 0x15c   : > { %v1076_v60 = vpop.eup %1075  ;;  %v514_v61 = vmul.f32 0.6931472, %v1074_v59 }
 0x15d   : > { %v533_v1 = vmul.f32 0.6931472, %v1076_v60  ;;  %v1078_v10 = vpop.eup %1077 }
 0x15e   : > { %v520_v3 = vsel %vm519_vm2, %v517_v62, %v514_v61  ;;  %v576_v13 = vadd.f32 1.0, %v1078_v10  ;;  %v579_v16 = vmul.f32 -0.5, %v1078_v10  ;;  %v582_v25 = vand.u32 2147483647, %v1078_v10 }
 0x15f   : > { %v521_v5 = vadd.f32 %v520_v3, %v505_v63  ;;  %v539_v6 = vsel %vm538_vm3, %v536_v2, %v533_v1  ;;  %v593_v61 = vadd.f32 0.5, %v592_v58  ;;  %v597_v2 = vmax.f32 %v596_v44, 0.0 }
 0x160   : > { %v540_v7 = vadd.f32 %v539_v6, %v524_v4  ;;  %1079 = vlog2.f32 %v576_v13  ;;  %v580_v19 = vadd.f32 1.0, %v579_v16  ;;  %vm583_vm6 = vcmp.lt.f32.partialorder %v582_v25, 0.0004427343 }
 0x161   : > { %v522_v8 = vsel %vm506_vm4, %v504_v33, %v521_v5  ;;  %v337_v33 = vadd.s32 1, %v1459_v22 }
 0x162   : > { %v541_v9 = vsel %vm525_vm5, %v523_v35, %v540_v7  ;;  %v581_v28 = vmul.f32 %v1078_v10, %v580_v19 }
 0x163   : > { %v542_v11 = vsub.f32 %v522_v8, %v541_v9  ;;  %vm338_vm8 = vcmp.le.s32.totalorder %v336_v32, %v337_v33 }
 0x164   : > { %vm340_vm11 = vmand %vm338_vm8, %vm339_vm9 }
 0x165   : > { %v546_v12 = vand.u32 2147483647, %v542_v11  ;;  %v543_v42 = vmax.f32 %v542_v11, 0.0  ;;  %vm544_vm13 = vcmp.ne.f32.partialorder %v542_v11, %v542_v11  ;;  %v341_v50 = vsel %vm340_vm11, 1.0, %v1249_v0 }
 0x167   : > { %v547_v14 = vsub.f32 0.0, %v546_v12 }
 0x169   : > { %v548_v15 = vmul.f32 1.442695, %v547_v14 }
 0x16a   : > { %v1080_v18 = vpop.eup %1079 }
 0x16b   : > { %1081 = vpow2.f32 %v548_v15  ;;  %v578_v27 = vmul.f32 0.6931472, %v1080_v18 }
 0x16d   : > { %v584_v31 = vsel %vm583_vm6, %v581_v28, %v578_v27 }
 0x16e   : > { %v585_v35 = vadd.f32 %v584_v31, %v569_v29  ;;  %v332_v29 = vld [vmem:[%s1557_s4] sm:$0xff] }
 0x170   : > { %v586_v41 = vsel %vm570_vm7, %v1473_v45, %v585_v35 }
 0x171   : > { %v587_v47 = vsub.f32 0.0, %v586_v41 }
 0x175   : > { %v1082_v20 = vpop.eup %1081 }
 0x176   : > { %v550_v26 = vadd.f32 1.0, %v1082_v20  ;;  %v553_v30 = vmul.f32 -0.5, %v1082_v20  ;;  %v556_v36 = vand.u32 2147483647, %v1082_v20 }
 0x178   : > { %1083 = vlog2.f32 %v550_v26  ;;  %v554_v34 = vadd.f32 1.0, %v553_v30  ;;  %vm557_vm10 = vcmp.lt.f32.partialorder %v556_v36, 0.0004427343 }
 0x179   : > { %1085 = vlog2.f32 %v565_v24 }
 0x17a   : > { %v555_v40 = vmul.f32 %v1082_v20, %v554_v34  ;;  %1087 = vpow2.f32 %v602_v55 }
 0x182   : > { %v1084_v37 = vpop.eup %1083 }
 0x183   : > { %v1086_v38 = vpop.eup %1085  ;;  %v552_v39 = vmul.f32 0.6931472, %v1084_v37 }
 0x184   : > { %v567_v43 = vmul.f32 0.6931472, %v1086_v38  ;;  %v1088_v0 = vpop.eup %1087 }
 0x185   : > { %v558_v21 = vsel %vm557_vm10, %v555_v40, %v552_v39  ;;  %v604_v56 = vadd.f32 1.0, %v1088_v0  ;;  %v607_v57 = vmul.f32 -0.5, %v1088_v0  ;;  %v610_v62 = vand.u32 2147483647, %v1088_v0 }
 0x186   : > { %v559_v46 = vadd.f32 %v558_v21, %v543_v42  ;;  %v588_v22 = vsel %vm563_vm12, %v567_v43, %v587_v47 }
 0x187   : > { %1089 = vlog2.f32 %v604_v56  ;;  %v608_v59 = vadd.f32 1.0, %v607_v57  ;;  %vm611_vm15 = vcmp.lt.f32.partialorder %v610_v62, 0.0004427343 }
 0x188   : > { %v560_v48 = vsel %vm544_vm13, %v542_v11, %v559_v46  ;;  %1091 = vlog2.f32 %v593_v61 }
 0x189   : > { %v561_v49 = vsub.f32 0.0, %v560_v48  ;;  %v609_v1 = vmul.f32 %v1088_v0, %v608_v59 }
 0x18b   : > { %968 = vmatpush3.msra.mxu0 %v561_v49  ;;  %v562_v45 = vadd.f32 %v561_v49, %v542_v11 }
 0x18c   : > { %970 = vmatmul.mubr.msk.f32.vlgmr.msra.gmra.mrb[2].mxu0 %vm617_vm14, %v341_v50 }
 0x18d   : > { %v589_v51 = vadd.f32 %v588_v22, %v562_v45 }
 0x191   : > { %v1090_v60 = vpop.eup %1089 }
 0x192   : > { %v606_v63 = vmul.f32 0.6931472, %v1090_v60  ;;  %v1092_v8 = vpop.eup %1091 }
 0x193   : > { %v595_v12 = vmul.f32 0.6931472, %v1092_v8 }
 0x194   : > { %v612_v3 = vsel %vm611_vm15, %v609_v1, %v606_v63 }
 0x195   : > { %v613_v4 = vadd.f32 %v612_v3, %v597_v2 }
 0x197   : > { %v614_v9 = vsel %vm598_vm0, %v596_v44, %v613_v4 }
 0x198   : > { %v615_v13 = vsub.f32 0.0, %v614_v9 }
 0x19a   : > { %v616_v16 = vsel %vm591_vm1, %v595_v12, %v615_v13 }
 0x19b   : > { %v692_v18 = vsub.f32 %v616_v16, %v561_v49 }
 0x25f   : > { %v687_v5 = vpop.f32.mrb[2].mxu0 }
 0x260   : > { %v691_v6 = vsub.f32 %v589_v51, %v687_v5  ;;  %v971_v7 = vpop.f32.mrb[3].mxu0 }
 0x262   : > { %v693_v10 = vrot.slane %v691_v6, 4 }
 0x264   : > { %v694_v11 = vmax.f32 %v691_v6, %v693_v10 }
 0x266   : > { %v695_v14 = vrot.slane %v694_v11, 2 }
 0x268   : > { %v696_v15 = vmax.f32 %v694_v11, %v695_v14 }
 0x26a   : > { %v697_v17 = vrot.slane %v696_v15, 1 }
 0x26c   : > { %v698_v19 = vmax.f32 %v696_v15, %v697_v17 }
 0x26e   : > { %v699_v20 = vmax.f32 %v698_v19, %v692_v18 }
 0x270   : > { %v703_v24 = vrot.slane %v699_v20, %v1462_v23  ;;  %v710_v25 = vsub.f32 %v692_v18, %v699_v20 }
 0x272   : > { %v704_v26 = vsub.f32 %v691_v6, %v703_v24  ;;  %v707_v27 = vadd.f32 %v703_v24, %v687_v5  ;;  %v711_v31 = vmul.f32 1.442695, %v710_v25 }
 0x274   : > { %v705_v28 = vmul.f32 1.442695, %v704_v26  ;;  %v708_v32 = vmul.f32 1.442695, %v707_v27 }
 0x276   : > { %1093 = vpow2.f32 %v705_v28 }
 0x277   : > { %1095 = vpow2.f32 %v711_v31 }
 0x278   : > { %1097 = vpow2.f32 %v708_v32 }
 0x280   : > { %v1094_v30 = vpop.eup %1093 }
 0x281   : > { %973 = vmatpush3.msra.mxu1 %v1094_v30  ;;  %v1096_v33 = vpop.eup %1095 }
 0x282   : > { %975 = vmatmul.mubr.msk.f32.vlgmr.msra.gmra.mrb[2].mxu1 %vm617_vm14, %v332_v29  ;;  %v717_v34 = vrot.slane %v1096_v33, %v1462_v23  ;;  %v1098_v38 = vpop.eup %1097 }
 0x355   : > { %v788_v35 = vpop.f32.mrb[2].mxu1 }
 0x356   : > { %v789_v36 = vadd.f32 %v788_v35, %v717_v34  ;;  %v976_v37 = vpop.f32.mrb[3].mxu1 }
 0x358   : > { %v792_v39 = vmul.f32 %v1098_v38, %v789_v36 }
 0x35a   : > { %793 = vst [vmem:[%s308_s14] sm:$0xff] %v792_v39 }
 0x35b   : > { %1170 = shalt.err (!%p1167_p9)
}
 0x35c   : > { %s1171_s8 = scalar_lea.hbm %s1504_s26, 128  ;;  %s1175_s11 = scalar_lea.hbm %s1558_s5, 256 }
 0x35d   : > { %p1172_p1 = scmp.ne.s32.totalorder %s1504_s26, %s1171_s8  ;;  %p1176_p3 = scmp.lt.u32.totalorder %s1504_s26, %s1558_s5 }
 0x35e   : > { %p1177_p13 = scmp.lt.u32.totalorder %s1175_s11, %s1171_s8  ;;  %p1179_p6 = scmp.lt.u32.totalorder %s1171_s8, %s1504_s26 }
 0x35f   : > { %p1173_p2 = pnand %p1172_p1, %p1379_p10 }
 0x360   : > { %p1178_p4 = por %p1177_p13, %p1176_p3 }
 0x361   : > { %p1174_p7 = pneg %p1173_p2 }
 0x362   : > { %p1180_p8 = por %p1179_p6, %p1178_p4 }
 0x364   : > { %p1181_p12 = pnand %p1180_p8, %p1174_p7 }
 0x366   : > { %1184 = shalt.err (!%p1181_p12)
}
 0x367   : > { %997 = dma.vmem_to_hbm [thread:$0]  (%p1379_p10), %s1506_s16, 128, %s1504_s26, %s795_s28  }
 0x368 PF: > { %s821_s14 = sand.u32 1, %s1223_s18   ;;  %p1576_p11 = scmp.ne.s32.totalorder %s1566_s29, 0 }
 0x369   : > { %p1577_p0 = scmp.ge.s32.totalorder %s1243_s23, 2  ;;  %s822_s12 = scalar_lea.sflag [#allocation4], %s821_s14 }
 0x36b   : > { %p1008_p5 = pnand %p1577_p0, %p1576_p11 }
 0x36d   : > { %1218 = dma.done.wait (!%p1008_p5), %s822_s12, 128  }
 0x36e   : > { %1220 = vsyncadd (!%p1008_p5), %s822_s12, 4294967168  ;;  %s22_s23 = sadd.s32 1, %s1243_s23   ;;  %s1578_s18 = smov %s1227_s19 }
 0x36f   : > { %p19_p9 = scmp.ge.s32.totalorder %s22_s23, 4   ;;  %s1579_s19 = smov %s1231_s20 }
 0x370   : > { %s1580_s20 = smov %s1388_s15  ;;  %s1581_s21 = smov %s1239_s22 }
 0x371   : > { %s1582_s22 = smov %s1584_s9  ;;  %21 = sbr.rel (!%p19_p9) target bundleno = 7 (0x7), region = 96 }
 0x378   :  { %827 = vsyncpa [#allocation3], 1 }
 0x379   :  { %829 = vsyncpa [#allocation3 + $0x1], 1 }
 0x37a   :  { %830 = vsyncpa [#allocation6], 1 }
 0x37b   :  { %831 = vsyncpa [#allocation4], 1 }
 0x37c   :  { %833 = vsyncpa [#allocation4 + $0x1], 1 }

</bundles_post_ra>
